<compile_context>
chip_gen: v5e
topology: v5e:2x2
jax: 0.10.0
libtpu: 0.0.40
codegen_flags: <defaults>
</compile_context>

<pallas_src>
import math

import jax
import jax.numpy as jnp
from jax.experimental import pallas as pl
from jax.experimental.pallas import tpu as pltpu


# ----------------------------------------------------------------------------
# Fused Pallas kernel (whole-array VMEM residents, no grid, no pipelining)
# ----------------------------------------------------------------------------
def _up_fused_kernel(x_ref, s1_ref, a_ref, w_ref, c_ref, o_ref):
    """Row layout: rows = frames f, columns = b * C + c.

    x_ref  : (F, B*Din)       input
    s1_ref : (F, B*Din)       folded bn1 scale
    a_ref  : (2, B*Din, B*N)  [0] = kron(I_B, [I | W_up])
                              [1] = kron(I_B, [I | W_up] @ kron(att, I_3))
    w_ref  : (F, F)           GraphConvolution frame-mixing weight
    c_ref  : (3, F, B*N)      [0] = d1        (bn1-shift / up-bias fold, residual branch)
                              [1] = bn2 scale
                              [2] = t2_fold   (graph bias + c@M + bn1/bn2 shift fold)
    o_ref  : (F, B*N)         output
    """
    # bn1 (eval mode); the shift is folded into d1 / t2_fold on host.
    xs = x_ref[...] * s1_ref[...]
    # Residual branch: out = concat([bn1(x), up(bn1(x))]) — independent of the gl chain,
    # so Mosaic can overlap its MXU latency with the A2 matmul below.
    out = jnp.dot(xs, a_ref[0], preferred_element_type=jnp.float32) + c_ref[0]
    # GraphConvolution branch: depth-2 MXU chain (feature mix pre-folded into A2).
    t = jnp.dot(xs, a_ref[1], preferred_element_type=jnp.float32)
    gl = jnp.dot(w_ref[...], t, preferred_element_type=jnp.float32)
    # bn2 (eval, folded) + relu; dropout is identity in eval mode.
    z = jnp.maximum(gl * c_ref[1] + c_ref[2], 0.0)
    o_ref[...] = (z + out).astype(o_ref.dtype)


def up_forward(prep, x):
    """x: (frame_num, batch, input_size) -> (frame_num, batch, output_size)."""
    f, b, din = x.shape
    bn = prep["C"].shape[-1]          # B*N
    n = bn // b
    x2d = x.reshape(f, b * din)       # contiguous view: row f, column b*din + d

    vmem = lambda: pl.BlockSpec(memory_space=pltpu.MemorySpace.VMEM)
    out2d = pl.pallas_call(
        _up_fused_kernel,
        out_shape=jax.ShapeDtypeStruct((f, bn), x.dtype),
        in_specs=[vmem() for _ in range(5)],
        out_specs=vmem(),
    )(x2d, prep["s1"], prep["A"], prep["W"], prep["C"])
    return out2d.reshape(f, b, n)     # contiguous, free


# ----------------------------------------------------------------------------
# Parameter construction (mirrors the PyTorch module init) and folding
# ----------------------------------------------------------------------------
def _xavier_normal(key, fan_out, fan_in, shape):
    std = math.sqrt(2.0 / (fan_in + fan_out))
    return std * jax.random.normal(key, shape, dtype=jnp.float32)


def init_raw_params(key, frame_num, input_size, output_size, adj):
    node = output_size // 3
    k_up, k_glw, k_glq, k_glb = jax.random.split(key, 4)

    raw = {}
    # up: nn.Linear(input_size, 3), xavier_normal weight, bias = 0.1 (stored as (Din, 3))
    raw["W_up"] = _xavier_normal(k_up, 3, input_size, (input_size, 3))
    raw["b_up"] = jnp.full((3,), 0.1, jnp.float32)

    # GraphConvolution(frame_num -> frame_num, node_n=output_size, dim=3)
    stdv = 1.0 / math.sqrt(node)
    raw["gl_w"] = jax.random.uniform(k_glw, (frame_num, frame_num),
                                     minval=-stdv, maxval=stdv, dtype=jnp.float32)
    q = jax.random.uniform(k_glq, (node, node), minval=0.01, maxval=0.24,
                           dtype=jnp.float32)
    raw["att"] = jnp.asarray(adj, jnp.float32) + q            # Ap + Q
    raw["gl_b"] = jax.random.uniform(k_glb, (output_size,),
                                     minval=-stdv, maxval=stdv, dtype=jnp.float32)

    # BatchNorm1d: init_weight -> gamma=1, beta=0; fresh running stats mean=0, var=1
    def bn(nfeat):
        return (jnp.ones((nfeat,), jnp.float32), jnp.zeros((nfeat,), jnp.float32),
                jnp.zeros((nfeat,), jnp.float32), jnp.ones((nfeat,), jnp.float32))
    raw["bn1"] = bn(frame_num * input_size)
    raw["bn2"] = bn(frame_num * output_size)
    return raw


def _fold_bn(gamma, beta, mean, var, eps=1e-5):
    scale = gamma / jnp.sqrt(var + eps)
    shift = beta - mean * scale
    return scale, shift


def prepare_params(raw, frame_num, batch, input_size, output_size):
    """One-time weight preprocessing: fold BN, fuse concat, fold the graph feature mix
    and every bias/shift term, and pack operands to cut the input count to 5."""
    f, b, din, n = frame_num, batch, input_size, output_size

    s1, t1 = _fold_bn(*raw["bn1"])                       # (f*din,)
    s2, t2 = _fold_bn(*raw["bn2"])                       # (f*n,)
    # Row layout (F, B*C): tile the per-frame BN vectors across the batch columns.
    s1p = jnp.tile(s1.reshape(f, din), (1, b))           # (f, b*din)
    t1p = jnp.tile(t1.reshape(f, din), (1, b))
    s2p = jnp.tile(s2.reshape(f, n), (1, b))             # (f, b*n)
    t2p = jnp.tile(t2.reshape(f, n), (1, b))

    a_cat = jnp.concatenate([jnp.eye(din, dtype=jnp.float32), raw["W_up"]], axis=1)  # (din, n)
    c_cat = jnp.concatenate([jnp.zeros((din,), jnp.float32), raw["b_up"]])           # (n,)
    m = jnp.kron(raw["att"], jnp.eye(3, dtype=jnp.float32))                          # (n, n)

    eye_b = jnp.eye(b, dtype=jnp.float32)
    a1 = jnp.kron(eye_b, a_cat)                          # (b*din, b*n)  up-proj + concat
    a2 = jnp.kron(eye_b, a_cat @ m)                      # (b*din, b*n)  ... + feature mix
    c1 = jnp.tile(c_cat[None, :], (1, b))                # (1, b*n)
    cm = jnp.tile((c_cat @ m)[None, :], (1, b))          # (1, b*n)
    gb = jnp.tile(raw["gl_b"][None, :], (1, b))          # (1, b*n)

    # Residual-branch constant: bn1 shift through A1 plus the up bias.
    d1 = t1p @ a1 + c1                                                    # (f, b*n)
    # Graph-branch constant: bn1 shift through A2, the (c @ M) broadcast term
    # (= rowsum(gl_w) * cM), and the graph bias — then fold bn2 on top.
    bias_full = (raw["gl_w"] @ (t1p @ a2)
                 + jnp.sum(raw["gl_w"], axis=1, keepdims=True) * cm
                 + gb)                                                    # (f, b*n)
    t2_fold = bias_full * s2p + t2p

    return {
        "s1": s1p,                                       # (f, b*din)
        "A": jnp.stack([a1, a2], axis=0),                # (2, b*din, b*n)
        "W": raw["gl_w"],                                # (f, f)
        "C": jnp.stack([d1, s2p, t2_fold], axis=0),      # (3, f, b*n)
    }


# ----------------------------------------------------------------------------
# Pure-JAX reference (follows the PyTorch forward literally) for validation
# ----------------------------------------------------------------------------
def reference_forward(raw, x, node, eps=1e-5):
    f, b, din = x.shape
    g1, be1, m1, v1 = raw["bn1"]
    xb = jnp.transpose(x, (1, 0, 2)).reshape(b, -1)
    yb = (xb - m1) / jnp.sqrt(v1 + eps) * g1 + be1
    y = jnp.transpose(yb.reshape(b, f, din), (1, 0, 2))
    up = y @ raw["W_up"] + raw["b_up"]
    output = jnp.concatenate([y, up], axis=2)                  # (f, b, n)
    n = output.shape[-1]
    # GraphConvolution on (b, f, n)
    xg = jnp.transpose(output, (1, 0, 2))
    x4 = xg.reshape(b, f, node, 3).transpose(0, 1, 3, 2)       # (b, f, 3, node)
    support = jnp.matmul(x4, raw["att"]).transpose(0, 1, 3, 2).reshape(b, f, n)
    glo = jnp.einsum("ij,bjn->bin", raw["gl_w"], support) + raw["gl_b"]
    g2, be2, m2, v2 = raw["bn2"]
    zb = (glo.reshape(b, -1) - m2) / jnp.sqrt(v2 + eps) * g2 + be2
    z = jnp.transpose(zb.reshape(b, f, n), (1, 0, 2))
    z = jnp.maximum(z, 0.0)
    return z + output


# ----------------------------------------------------------------------------
# Main
# ----------------------------------------------------------------------------
if __name__ == "__main__":
    frame_num = 8        # f (number of frames / sequence length)
    batch = 2            # b
    input_size = 45      # per-frame feature size
    output_size = 48     # node_n = 16 joints * 3  (= input_size + 3, required by residual)
    node = output_size // 3

    key = jax.random.PRNGKey(0)
    k_adj, k_param, k_x = jax.random.split(key, 3)
    adj = jax.random.uniform(k_adj, (node, node), dtype=jnp.float32)
    adj = 0.5 * (adj + adj.T)                                  # deterministic symmetric adjacency

    raw = init_raw_params(k_param, frame_num, input_size, output_size, adj)
    prep = prepare_params(raw, frame_num, batch, input_size, output_size)
    x = jax.random.normal(k_x, (frame_num, batch, input_size), dtype=jnp.float32)

    fwd = jax.jit(up_forward)
    y = fwd(prep, x)
    jax.block_until_ready(y)
    assert y.shape == (frame_num, batch, output_size)

    y_ref = reference_forward(raw, x, node)
    rel_err = float(jnp.max(jnp.abs(y - y_ref)) / (jnp.max(jnp.abs(y_ref)) + 1e-6))
    assert rel_err < 1e-4, f"mismatch vs reference, rel_err={rel_err}"
    print("KERNEL_OK")
</pallas_src>

<mosaic_0001>
module attributes {stable_mosaic.version = 11 : i64} {
  func.func @_up_fused_kernel(%arg0: memref<8x90xf32, #tpu.memory_space<vmem>>, %arg1: memref<8x90xf32, #tpu.memory_space<vmem>>, %arg2: memref<2x90x96xf32, #tpu.memory_space<vmem>>, %arg3: memref<8x8xf32, #tpu.memory_space<vmem>>, %arg4: memref<3x8x96xf32, #tpu.memory_space<vmem>>, %arg5: memref<8x96xf32, #tpu.memory_space<vmem>>) attributes {dimension_semantics = [], scalar_prefetch = 0 : i64, scratch_operands = 0 : i64, tpu.core_type = #tpu.core_type<tc>} {
    %c0 = arith.constant 0 : index
    %c0_0 = arith.constant 0 : index
    %0 = vector.load %arg0[%c0, %c0_0] : memref<8x90xf32, #tpu.memory_space<vmem>>, vector<8x90xf32>
    %c0_1 = arith.constant 0 : index
    %c0_2 = arith.constant 0 : index
    %1 = vector.load %arg1[%c0_1, %c0_2] : memref<8x90xf32, #tpu.memory_space<vmem>>, vector<8x90xf32>
    %2 = arith.mulf %0, %1 : vector<8x90xf32>
    %c0_3 = arith.constant 0 : index
    %c0_4 = arith.constant 0 : index
    %c0_5 = arith.constant 0 : index
    %3 = vector.load %arg2[%c0_3, %c0_4, %c0_5] : memref<2x90x96xf32, #tpu.memory_space<vmem>>, vector<1x90x96xf32>
    %4 = vector.shape_cast %3 : vector<1x90x96xf32> to vector<90x96xf32>
    %cst = arith.constant dense<0.000000e+00> : vector<8x96xf32>
    %5 = tpu.matmul %2, %4, %cst {dimension_numbers = #tpu.dot_dimension_numbers<[1], [0], [0], [1], [0, 0, 1, 1], [], []>} : vector<8x90xf32>, vector<90x96xf32>, vector<8x96xf32> -> vector<8x96xf32>
    %c0_6 = arith.constant 0 : index
    %c0_7 = arith.constant 0 : index
    %c0_8 = arith.constant 0 : index
    %6 = vector.load %arg4[%c0_6, %c0_7, %c0_8] : memref<3x8x96xf32, #tpu.memory_space<vmem>>, vector<1x8x96xf32>
    %7 = vector.shape_cast %6 : vector<1x8x96xf32> to vector<8x96xf32>
    %8 = arith.addf %5, %7 : vector<8x96xf32>
    %c1 = arith.constant 1 : index
    %c0_9 = arith.constant 0 : index
    %c0_10 = arith.constant 0 : index
    %9 = vector.load %arg2[%c1, %c0_9, %c0_10] : memref<2x90x96xf32, #tpu.memory_space<vmem>>, vector<1x90x96xf32>
    %10 = vector.shape_cast %9 : vector<1x90x96xf32> to vector<90x96xf32>
    %cst_11 = arith.constant dense<0.000000e+00> : vector<8x96xf32>
    %11 = tpu.matmul %2, %10, %cst_11 {dimension_numbers = #tpu.dot_dimension_numbers<[1], [0], [0], [1], [0, 0, 1, 1], [], []>} : vector<8x90xf32>, vector<90x96xf32>, vector<8x96xf32> -> vector<8x96xf32>
    %c0_12 = arith.constant 0 : index
    %c0_13 = arith.constant 0 : index
    %12 = vector.load %arg3[%c0_12, %c0_13] : memref<8x8xf32, #tpu.memory_space<vmem>>, vector<8x8xf32>
    %cst_14 = arith.constant dense<0.000000e+00> : vector<8x96xf32>
    %13 = tpu.matmul %12, %11, %cst_14 {dimension_numbers = #tpu.dot_dimension_numbers<[1], [0], [0], [1], [0, 0, 1, 1], [], []>} : vector<8x8xf32>, vector<8x96xf32>, vector<8x96xf32> -> vector<8x96xf32>
    %c1_15 = arith.constant 1 : index
    %c0_16 = arith.constant 0 : index
    %c0_17 = arith.constant 0 : index
    %14 = vector.load %arg4[%c1_15, %c0_16, %c0_17] : memref<3x8x96xf32, #tpu.memory_space<vmem>>, vector<1x8x96xf32>
    %15 = vector.shape_cast %14 : vector<1x8x96xf32> to vector<8x96xf32>
    %16 = arith.mulf %13, %15 : vector<8x96xf32>
    %c2 = arith.constant 2 : index
    %c0_18 = arith.constant 0 : index
    %c0_19 = arith.constant 0 : index
    %17 = vector.load %arg4[%c2, %c0_18, %c0_19] : memref<3x8x96xf32, #tpu.memory_space<vmem>>, vector<1x8x96xf32>
    %18 = vector.shape_cast %17 : vector<1x8x96xf32> to vector<8x96xf32>
    %19 = arith.addf %16, %18 : vector<8x96xf32>
    %cst_20 = arith.constant 0.000000e+00 : f32
    %20 = vector.broadcast %cst_20 : f32 to vector<8x96xf32>
    %21 = arith.maximumf %19, %20 : vector<8x96xf32>
    %22 = arith.addf %21, %8 : vector<8x96xf32>
    %c0_21 = arith.constant 0 : index
    %c0_22 = arith.constant 0 : index
    %23 = vector.load %arg5[%c0_21, %c0_22] : memref<8x96xf32, #tpu.memory_space<vmem>>, vector<8x96xf32>
    tpu.vector_store %arg5[%c0_21, %c0_22], %22 {strides = array<i32>} : memref<8x96xf32, #tpu.memory_space<vmem>>, vector<8x96xf32>,
    return
  }
}

</mosaic_0001>

<bundles_post_ra>
// kernel: up_forward.1
= control target key start
LH: loop header
LB: loop body
LE: loop exit
PB: predicated region body
PF: predicated region fallthrough
CT: control target
= control target key end

     0   :  { %vm40_vm0 = vcmask 1041408   ;;  %vm36_vm1 = vcmask 736256   ;;  %vm101_vm2 = vcmask 64512   ;;  %vm133_vm3 = vcmask 785408   ;;  %s281_s2 = inlined_call_operand.vmem [shape: f32[2,90,96], index: 2, kind: input, shape index: {}]   ;;  %s282_s0 = inlined_call_operand.vmem [shape: f32[8,90], index: 0, kind: input, shape index: {}]   ;;  %s283_s1 = inlined_call_operand.vmem [shape: f32[8,90], index: 1, kind: input, shape index: {}]   ;;  %s284_s3 = inlined_call_operand.vmem [shape: f32[8,8], index: 3, kind: input, shape index: {}]   ;;  %s285_s4 = inlined_call_operand.vmem [shape: f32[3,8,96], index: 4, kind: input, shape index: {}]   ;;  %s286_s5 = inlined_call_operand.vmem [shape: f32[8,96], index: 5, kind: output, shape index: {}]  }
   0x1   :  { %v152_v0 = vld [vmem:[%s281_s2 + $0xb8] sm:$0x3]  ;;  %v151_v1 = vld [vmem:[%s281_s2 + $0xb0] sm:$0xff]  ;;  %v150_v2 = vld [vmem:[%s281_s2 + $0xa8] sm:$0xff] }
   0x2   :  { %153 = vmatpush.msk.msra.mxu1 %vm40_vm0, %v152_v0  ;;  %v149_v3 = vld [vmem:[%s281_s2 + $0xa0] sm:$0xff]  ;;  %v34_v4 = vld [vmem:[%s281_s2 + $0x58] sm:$0x3]  ;;  %v33_v5 = vld [vmem:[%s281_s2 + $0x50] sm:$0xff] }
   0x3   :  { %139 = vmatpush.msk.msra.mxu0 %vm40_vm0, %v34_v4  ;;  %v148_v6 = vld [vmem:[%s281_s2 + $0x98] sm:$0xff]  ;;  %v32_v7 = vld [vmem:[%s281_s2 + $0x48] sm:$0xff]  ;;  %v147_v8 = vld [vmem:[%s281_s2 + $0x90] sm:$0xff] }
   0x4   :  { %85 = vmatpush.msra.mxu1 %v151_v1  ;;  %v31_v9 = vld [vmem:[%s281_s2 + $0x40] sm:$0xff]  ;;  %v146_v10 = vld [vmem:[%s281_s2 + $0x88] sm:$0xff]  ;;  %v30_v11 = vld [vmem:[%s281_s2 + $0x38] sm:$0xff] }
   0x5   :  { %49 = vmatpush.msra.mxu0 %v33_v5  ;;  %v145_v12 = vld [vmem:[%s281_s2 + $0x80] sm:$0xff]  ;;  %v29_v13 = vld [vmem:[%s281_s2 + $0x30] sm:$0xff]  ;;  %v144_v14 = vld [vmem:[%s281_s2 + $0x78] sm:$0xff] }
   0x6   :  { %86 = vmatpush.msra.mxu1 %v150_v2  ;;  %v143_v15 = vld [vmem:[%s281_s2 + $0x70] sm:$0xff]  ;;  %v20_v16 = vld [vmem:[%s282_s0] sm:$0xff]  ;;  %v142_v18 = vld [vmem:[%s281_s2 + $0x68] sm:$0xff] }
   0x7   :  { %50 = vmatpush.msra.mxu0 %v32_v7  ;;  %v21_v17 = vld [vmem:[%s283_s1] sm:$0xff]  ;;  %v28_v21 = vld [vmem:[%s281_s2 + $0x28] sm:$0xff]  ;;  %v26_v23 = vld [vmem:[%s281_s2 + $0x18] sm:$0xff] }
   0x8   :  { %87 = vmatpush.msra.mxu1 %v149_v3  ;;  %v141_v19 = vld [vmem:[%s281_s2 + $0x60] sm:$0xff]  ;;  %v22_v20 = vmul.f32 %v21_v17, %v20_v16  ;;  %v25_v24 = vld [vmem:[%s281_s2 + $0x10] sm:$0xff]  ;;  %v24_v25 = vld [vmem:[%s281_s2 + $0x8] sm:$0xff] }
   0x9   :  { %51 = vmatpush.msra.mxu0 %v31_v9  ;;  %v27_v22 = vld [vmem:[%s281_s2 + $0x20] sm:$0xff]  ;;  %v156_v29 = vld [vmem:[%s285_s4 + $0x8] sm:$0xff]  ;;  %v157_v31 = vld [vmem:[%s285_s4 + $0x10] sm:$0xff] }
   0xa   :  { %88 = vmatpush.msra.mxu1 %v148_v6  ;;  %v23_v26 = vld [vmem:[%s281_s2] sm:$0xff] }
   0xb   :  { %52 = vmatpush.msra.mxu0 %v30_v11  ;;  %v100_v27 = vld [vmem:[%s284_s3] sm:$0xff] }
   0xc   :  { %89 = vmatpush.msra.mxu1 %v147_v8  ;;  %v35_v32 = vld [vmem:[%s285_s4] sm:$0xff] }
   0xd   :  { %53 = vmatpush.msra.mxu0 %v29_v13 }
   0xe   :  { %90 = vmatpush.msra.mxu1 %v146_v10 }
   0xf   :  { %54 = vmatpush.msra.mxu0 %v28_v21 }
  0x10   :  { %91 = vmatpush.msra.mxu1 %v145_v12 }
  0x11   :  { %55 = vmatpush.msra.mxu0 %v27_v22 }
  0x12   :  { %92 = vmatpush.msra.mxu1 %v144_v14 }
  0x13   :  { %56 = vmatpush.msra.mxu0 %v26_v23 }
  0x14   :  { %93 = vmatpush.msra.mxu1 %v143_v15 }
  0x15   :  { %57 = vmatpush.msra.mxu0 %v25_v24 }
  0x16   :  { %94 = vmatpush.msra.mxu1 %v142_v18 }
  0x17   :  { %58 = vmatpush.msra.mxu0 %v24_v25 }
  0x18   :  { %95 = vmatpush.msra.mxu1 %v141_v19 }
  0x19   :  { %154 = vmatmul.msk.f32.vlgmr.msra.gmra.mxu1 %vm36_vm1, %v22_v20  ;;  %59 = vmatpush.msra.mxu0 %v23_v26 }
  0x1a   :  { %140 = vmatmul.msk.f32.vlgmr.msra.gmra.mxu0 %vm36_vm1, %v22_v20 }
  0x96   :  { %v97_v28 = vpop.f32.mrf.mxu1 }
  0x97   :  { %120 = vmatpush.msra.mxu2 %v97_v28  ;;  %v61_v33 = vpop.f32.mrf.mxu0 }
  0x98   :  { %155 = vmatmul.msk.f32.vlgmr.msra.gmra.mxu2 %vm101_vm2, %v100_v27  ;;  %v62_v36 = vadd.f32 %v61_v33, %v35_v32 }
 0x11b   :  { %v122_v30 = vpop.f32.mrf.mxu2 }
 0x11c   :  { %v127_v34 = vmul.f32 %v156_v29, %v122_v30 }
 0x11e   :  { %v130_v35 = vadd.f32 %v157_v31, %v127_v34 }
 0x120   :  { %v131_v37 = vmax.f32 %v130_v35, 0.0 }
 0x122   :  { %v132_v38 = vadd.f32 %v131_v37, %v62_v36 }
 0x124   :  { %134 = vst.msk [vmem:[%s286_s5] sm:$0xff] %vm133_vm3, %v132_v38 }

</bundles_post_ra>
